<compile_context>
chip_gen: v7x
topology: tpu7x:2x2x1
jax: 0.10.0
libtpu: 0.0.40
codegen_flags: <defaults>
</compile_context>

<pallas_src>
import jax
import jax.numpy as jnp
from jax.experimental import pallas as pl
from jax.experimental.pallas import tpu as pltpu

INPUT_DIM = 2
HIDDEN = 16
OUT = 1


def discriminator_kernel(w1_ref, b1_ref, w2_ref, b2_ref, x_ref, o_ref):
    # SMEM scalars:
    #   w1_ref: (32,)  = PyTorch (16, 2) flattened row-major -> w1[j, k] = w1_ref[2*j + k]
    #   b1_ref: (16,), w2_ref: (16,) = PyTorch (1, 16) flattened, b2_ref: (1,)
    # VMEM blocks:
    #   x_ref:  (2, TR, 128)  feature-major, batch on (sublane, lane)
    #   o_ref:  (TR, 128)     lane-dense sigmoid output
    x0 = x_ref[0]                      # (TR, 128) feature 0 for 128*TR samples
    x1 = x_ref[1]                      # (TR, 128) feature 1

    acc = jnp.zeros_like(x0)
    # 16 hidden units: scalar-broadcast FMAs on the VPU (MXU intentionally unused).
    for j in range(HIDDEN):
        h = w1_ref[2 * j] * x0 + w1_ref[2 * j + 1] * x1 + b1_ref[j]
        h = jnp.maximum(h, 0.0)        # ReLU
        acc = acc + w2_ref[j] * h
    z = acc + b2_ref[0]

    # Sigmoid: exp goes to the EUP; exact reciprocal keeps 1e-5-level accuracy.
    o_ref[...] = pl.reciprocal(1.0 + jnp.exp(-z), approx=False)


def discriminator_forward(x, w1, b1, w2, b2, *, max_rows_per_step=512):
    """x: (N, 2) float; w1: (16, 2); b1: (16,); w2: (1, 16); b2: (1,). Returns (N, 1)."""
    n, d = x.shape
    assert d == INPUT_DIM
    # NOTE: for very small N, plain XLA is cheaper than any pallas_call; we keep
    # the kernel path here so the Pallas code is exercised.

    # Batch -> (sublane, lane) slab: 128 samples per sublane row.
    rows = pl.cdiv(n, 128)                                   # sublane rows needed
    tr = min(max_rows_per_step, pl.cdiv(rows, 8) * 8)        # rows per grid step (mult. of 8)
    r_total = pl.cdiv(rows, tr) * tr                         # padded total rows
    n_pad = r_total * 128

    x_p = jnp.pad(x.astype(jnp.float32), ((0, n_pad - n), (0, 0)))   # (n_pad, 2)
    xt = x_p.T.reshape(INPUT_DIM, r_total, 128)                      # (2, R, 128)

    w1f = jnp.asarray(w1, jnp.float32).reshape(-1)   # (32,)
    b1f = jnp.asarray(b1, jnp.float32).reshape(-1)   # (16,)
    w2f = jnp.asarray(w2, jnp.float32).reshape(-1)   # (16,)
    b2f = jnp.asarray(b2, jnp.float32).reshape(-1)   # (1,)

    grid = (r_total // tr,)
    smem_spec = pl.BlockSpec(memory_space=pltpu.MemorySpace.SMEM)

    out2d = pl.pallas_call(
        discriminator_kernel,
        out_shape=jax.ShapeDtypeStruct((r_total, 128), jnp.float32),
        grid=grid,
        in_specs=[
            smem_spec,                                               # w1 (flat)
            smem_spec,                                               # b1
            smem_spec,                                               # w2 (flat)
            smem_spec,                                               # b2
            pl.BlockSpec((INPUT_DIM, tr, 128), lambda i: (0, i, 0)),  # x slab
        ],
        out_specs=pl.BlockSpec((tr, 128), lambda i: (i, 0)),
        compiler_params=pltpu.CompilerParams(
            dimension_semantics=("parallel",)),
        cost_estimate=pl.CostEstimate(
            flops=2 * n_pad * (INPUT_DIM * HIDDEN + HIDDEN),
            transcendentals=n_pad,
            bytes_accessed=4 * n_pad * (INPUT_DIM + 1)),
    )(w1f, b1f, w2f, b2f, xt)

    return out2d.reshape(n_pad)[:n].reshape(n, OUT)


def init_params(key):
    """PyTorch nn.Linear default init, native PyTorch shapes."""
    k1, k2, k3, k4 = jax.random.split(key, 4)
    bound1 = 1.0 / jnp.sqrt(float(INPUT_DIM))
    bound2 = 1.0 / jnp.sqrt(float(HIDDEN))
    w1 = jax.random.uniform(k1, (HIDDEN, INPUT_DIM), jnp.float32, -bound1, bound1)
    b1 = jax.random.uniform(k2, (HIDDEN,), jnp.float32, -bound1, bound1)
    w2 = jax.random.uniform(k3, (OUT, HIDDEN), jnp.float32, -bound2, bound2)
    b2 = jax.random.uniform(k4, (OUT,), jnp.float32, -bound2, bound2)
    return w1, b1, w2, b2


def _reference(x, w1, b1, w2, b2):
    h = jnp.maximum(x @ w1.T + b1, 0.0)
    z = h @ w2.T + b2
    return 1.0 / (1.0 + jnp.exp(-z))


if __name__ == "__main__":
    key = jax.random.PRNGKey(0)
    k_params, k_x1, k_x2 = jax.random.split(key, 3)
    w1, b1, w2, b2 = init_params(k_params)

    # Small batch (single grid step).
    batch = 8
    x = jax.random.normal(k_x1, (batch, INPUT_DIM), jnp.float32)
    out = jax.block_until_ready(discriminator_forward(x, w1, b1, w2, b2))
    ref = _reference(x, w1, b1, w2, b2)
    assert out.shape == (batch, OUT)
    assert jnp.allclose(out, ref, atol=1e-5, rtol=1e-5)

    # Larger, non-aligned batch with a small per-step tile to exercise the
    # multi-step pipelined grid and the padding/reshape path.
    batch2 = 2048
    x2 = jax.random.normal(k_x2, (batch2, INPUT_DIM), jnp.float32)
    out2 = jax.block_until_ready(
        discriminator_forward(x2, w1, b1, w2, b2, max_rows_per_step=8))
    ref2 = _reference(x2, w1, b1, w2, b2)
    assert out2.shape == (batch2, OUT)
    assert jnp.allclose(out2, ref2, atol=1e-5, rtol=1e-5)

    print("KERNEL_OK")
</pallas_src>

<mosaic_0001>
module attributes {stable_mosaic.version = 11 : i64} {
  func.func @discriminator_kernel(%arg0: i32, %arg1: memref<32xf32, #tpu.memory_space<smem>>, %arg2: memref<16xf32, #tpu.memory_space<smem>>, %arg3: memref<16xf32, #tpu.memory_space<smem>>, %arg4: memref<1xf32, #tpu.memory_space<smem>>, %arg5: memref<2x8x128xf32, #tpu.memory_space<vmem>>, %arg6: memref<8x128xf32, #tpu.memory_space<vmem>>) attributes {dimension_semantics = [#tpu.dimension_semantics<parallel>], iteration_bounds = array<i64: 1>, scalar_prefetch = 0 : i64, scratch_operands = 0 : i64, tpu.core_type = #tpu.core_type<tc>, window_params = [{transform_indices = @transform_0, window_bounds = array<i64: 32>}, {transform_indices = @transform_1, window_bounds = array<i64: 16>}, {transform_indices = @transform_2, window_bounds = array<i64: 16>}, {transform_indices = @transform_3, window_bounds = array<i64: 1>}, {transform_indices = @transform_4, window_bounds = array<i64: 2, 8, 128>}, {transform_indices = @transform_5, window_bounds = array<i64: 8, 128>}]} {
    %c0 = arith.constant 0 : index
    %c0_0 = arith.constant 0 : index
    %c0_1 = arith.constant 0 : index
    %0 = vector.load %arg5[%c0, %c0_0, %c0_1] : memref<2x8x128xf32, #tpu.memory_space<vmem>>, vector<1x8x128xf32>
    %1 = vector.shape_cast %0 : vector<1x8x128xf32> to vector<8x128xf32>
    %c1 = arith.constant 1 : index
    %c0_2 = arith.constant 0 : index
    %c0_3 = arith.constant 0 : index
    %2 = vector.load %arg5[%c1, %c0_2, %c0_3] : memref<2x8x128xf32, #tpu.memory_space<vmem>>, vector<1x8x128xf32>
    %3 = vector.shape_cast %2 : vector<1x8x128xf32> to vector<8x128xf32>
    %cst = arith.constant 0.000000e+00 : f32
    %4 = vector.broadcast %cst : f32 to vector<8x128xf32>
    %c0_4 = arith.constant 0 : index
    %5 = memref.load %arg1[%c0_4] : memref<32xf32, #tpu.memory_space<smem>>
    %6 = vector.broadcast %5 : f32 to vector<8x128xf32>
    %7 = arith.mulf %6, %1 : vector<8x128xf32>
    %c1_5 = arith.constant 1 : index
    %8 = memref.load %arg1[%c1_5] : memref<32xf32, #tpu.memory_space<smem>>
    %9 = vector.broadcast %8 : f32 to vector<8x128xf32>
    %10 = arith.mulf %9, %3 : vector<8x128xf32>
    %11 = arith.addf %7, %10 : vector<8x128xf32>
    %c0_6 = arith.constant 0 : index
    %12 = memref.load %arg2[%c0_6] : memref<16xf32, #tpu.memory_space<smem>>
    %13 = vector.broadcast %12 : f32 to vector<8x128xf32>
    %14 = arith.addf %11, %13 : vector<8x128xf32>
    %cst_7 = arith.constant 0.000000e+00 : f32
    %15 = vector.broadcast %cst_7 : f32 to vector<8x128xf32>
    %16 = arith.maximumf %14, %15 : vector<8x128xf32>
    %c0_8 = arith.constant 0 : index
    %17 = memref.load %arg3[%c0_8] : memref<16xf32, #tpu.memory_space<smem>>
    %18 = vector.broadcast %17 : f32 to vector<8x128xf32>
    %19 = arith.mulf %18, %16 : vector<8x128xf32>
    %20 = arith.addf %4, %19 : vector<8x128xf32>
    %c2 = arith.constant 2 : index
    %21 = memref.load %arg1[%c2] : memref<32xf32, #tpu.memory_space<smem>>
    %22 = vector.broadcast %21 : f32 to vector<8x128xf32>
    %23 = arith.mulf %22, %1 : vector<8x128xf32>
    %c3 = arith.constant 3 : index
    %24 = memref.load %arg1[%c3] : memref<32xf32, #tpu.memory_space<smem>>
    %25 = vector.broadcast %24 : f32 to vector<8x128xf32>
    %26 = arith.mulf %25, %3 : vector<8x128xf32>
    %27 = arith.addf %23, %26 : vector<8x128xf32>
    %c1_9 = arith.constant 1 : index
    %28 = memref.load %arg2[%c1_9] : memref<16xf32, #tpu.memory_space<smem>>
    %29 = vector.broadcast %28 : f32 to vector<8x128xf32>
    %30 = arith.addf %27, %29 : vector<8x128xf32>
    %cst_10 = arith.constant 0.000000e+00 : f32
    %31 = vector.broadcast %cst_10 : f32 to vector<8x128xf32>
    %32 = arith.maximumf %30, %31 : vector<8x128xf32>
    %c1_11 = arith.constant 1 : index
    %33 = memref.load %arg3[%c1_11] : memref<16xf32, #tpu.memory_space<smem>>
    %34 = vector.broadcast %33 : f32 to vector<8x128xf32>
    %35 = arith.mulf %34, %32 : vector<8x128xf32>
    %36 = arith.addf %20, %35 : vector<8x128xf32>
    %c4 = arith.constant 4 : index
    %37 = memref.load %arg1[%c4] : memref<32xf32, #tpu.memory_space<smem>>
    %38 = vector.broadcast %37 : f32 to vector<8x128xf32>
    %39 = arith.mulf %38, %1 : vector<8x128xf32>
    %c5 = arith.constant 5 : index
    %40 = memref.load %arg1[%c5] : memref<32xf32, #tpu.memory_space<smem>>
    %41 = vector.broadcast %40 : f32 to vector<8x128xf32>
    %42 = arith.mulf %41, %3 : vector<8x128xf32>
    %43 = arith.addf %39, %42 : vector<8x128xf32>
    %c2_12 = arith.constant 2 : index
    %44 = memref.load %arg2[%c2_12] : memref<16xf32, #tpu.memory_space<smem>>
    %45 = vector.broadcast %44 : f32 to vector<8x128xf32>
    %46 = arith.addf %43, %45 : vector<8x128xf32>
    %cst_13 = arith.constant 0.000000e+00 : f32
    %47 = vector.broadcast %cst_13 : f32 to vector<8x128xf32>
    %48 = arith.maximumf %46, %47 : vector<8x128xf32>
    %c2_14 = arith.constant 2 : index
    %49 = memref.load %arg3[%c2_14] : memref<16xf32, #tpu.memory_space<smem>>
    %50 = vector.broadcast %49 : f32 to vector<8x128xf32>
    %51 = arith.mulf %50, %48 : vector<8x128xf32>
    %52 = arith.addf %36, %51 : vector<8x128xf32>
    %c6 = arith.constant 6 : index
    %53 = memref.load %arg1[%c6] : memref<32xf32, #tpu.memory_space<smem>>
    %54 = vector.broadcast %53 : f32 to vector<8x128xf32>
    %55 = arith.mulf %54, %1 : vector<8x128xf32>
    %c7 = arith.constant 7 : index
    %56 = memref.load %arg1[%c7] : memref<32xf32, #tpu.memory_space<smem>>
    %57 = vector.broadcast %56 : f32 to vector<8x128xf32>
    %58 = arith.mulf %57, %3 : vector<8x128xf32>
    %59 = arith.addf %55, %58 : vector<8x128xf32>
    %c3_15 = arith.constant 3 : index
    %60 = memref.load %arg2[%c3_15] : memref<16xf32, #tpu.memory_space<smem>>
    %61 = vector.broadcast %60 : f32 to vector<8x128xf32>
    %62 = arith.addf %59, %61 : vector<8x128xf32>
    %cst_16 = arith.constant 0.000000e+00 : f32
    %63 = vector.broadcast %cst_16 : f32 to vector<8x128xf32>
    %64 = arith.maximumf %62, %63 : vector<8x128xf32>
    %c3_17 = arith.constant 3 : index
    %65 = memref.load %arg3[%c3_17] : memref<16xf32, #tpu.memory_space<smem>>
    %66 = vector.broadcast %65 : f32 to vector<8x128xf32>
    %67 = arith.mulf %66, %64 : vector<8x128xf32>
    %68 = arith.addf %52, %67 : vector<8x128xf32>
    %c8 = arith.constant 8 : index
    %69 = memref.load %arg1[%c8] : memref<32xf32, #tpu.memory_space<smem>>
    %70 = vector.broadcast %69 : f32 to vector<8x128xf32>
    %71 = arith.mulf %70, %1 : vector<8x128xf32>
    %c9 = arith.constant 9 : index
    %72 = memref.load %arg1[%c9] : memref<32xf32, #tpu.memory_space<smem>>
    %73 = vector.broadcast %72 : f32 to vector<8x128xf32>
    %74 = arith.mulf %73, %3 : vector<8x128xf32>
    %75 = arith.addf %71, %74 : vector<8x128xf32>
    %c4_18 = arith.constant 4 : index
    %76 = memref.load %arg2[%c4_18] : memref<16xf32, #tpu.memory_space<smem>>
    %77 = vector.broadcast %76 : f32 to vector<8x128xf32>
    %78 = arith.addf %75, %77 : vector<8x128xf32>
    %cst_19 = arith.constant 0.000000e+00 : f32
    %79 = vector.broadcast %cst_19 : f32 to vector<8x128xf32>
    %80 = arith.maximumf %78, %79 : vector<8x128xf32>
    %c4_20 = arith.constant 4 : index
    %81 = memref.load %arg3[%c4_20] : memref<16xf32, #tpu.memory_space<smem>>
    %82 = vector.broadcast %81 : f32 to vector<8x128xf32>
    %83 = arith.mulf %82, %80 : vector<8x128xf32>
    %84 = arith.addf %68, %83 : vector<8x128xf32>
    %c10 = arith.constant 10 : index
    %85 = memref.load %arg1[%c10] : memref<32xf32, #tpu.memory_space<smem>>
    %86 = vector.broadcast %85 : f32 to vector<8x128xf32>
    %87 = arith.mulf %86, %1 : vector<8x128xf32>
    %c11 = arith.constant 11 : index
    %88 = memref.load %arg1[%c11] : memref<32xf32, #tpu.memory_space<smem>>
    %89 = vector.broadcast %88 : f32 to vector<8x128xf32>
    %90 = arith.mulf %89, %3 : vector<8x128xf32>
    %91 = arith.addf %87, %90 : vector<8x128xf32>
    %c5_21 = arith.constant 5 : index
    %92 = memref.load %arg2[%c5_21] : memref<16xf32, #tpu.memory_space<smem>>
    %93 = vector.broadcast %92 : f32 to vector<8x128xf32>
    %94 = arith.addf %91, %93 : vector<8x128xf32>
    %cst_22 = arith.constant 0.000000e+00 : f32
    %95 = vector.broadcast %cst_22 : f32 to vector<8x128xf32>
    %96 = arith.maximumf %94, %95 : vector<8x128xf32>
    %c5_23 = arith.constant 5 : index
    %97 = memref.load %arg3[%c5_23] : memref<16xf32, #tpu.memory_space<smem>>
    %98 = vector.broadcast %97 : f32 to vector<8x128xf32>
    %99 = arith.mulf %98, %96 : vector<8x128xf32>
    %100 = arith.addf %84, %99 : vector<8x128xf32>
    %c12 = arith.constant 12 : index
    %101 = memref.load %arg1[%c12] : memref<32xf32, #tpu.memory_space<smem>>
    %102 = vector.broadcast %101 : f32 to vector<8x128xf32>
    %103 = arith.mulf %102, %1 : vector<8x128xf32>
    %c13 = arith.constant 13 : index
    %104 = memref.load %arg1[%c13] : memref<32xf32, #tpu.memory_space<smem>>
    %105 = vector.broadcast %104 : f32 to vector<8x128xf32>
    %106 = arith.mulf %105, %3 : vector<8x128xf32>
    %107 = arith.addf %103, %106 : vector<8x128xf32>
    %c6_24 = arith.constant 6 : index
    %108 = memref.load %arg2[%c6_24] : memref<16xf32, #tpu.memory_space<smem>>
    %109 = vector.broadcast %108 : f32 to vector<8x128xf32>
    %110 = arith.addf %107, %109 : vector<8x128xf32>
    %cst_25 = arith.constant 0.000000e+00 : f32
    %111 = vector.broadcast %cst_25 : f32 to vector<8x128xf32>
    %112 = arith.maximumf %110, %111 : vector<8x128xf32>
    %c6_26 = arith.constant 6 : index
    %113 = memref.load %arg3[%c6_26] : memref<16xf32, #tpu.memory_space<smem>>
    %114 = vector.broadcast %113 : f32 to vector<8x128xf32>
    %115 = arith.mulf %114, %112 : vector<8x128xf32>
    %116 = arith.addf %100, %115 : vector<8x128xf32>
    %c14 = arith.constant 14 : index
    %117 = memref.load %arg1[%c14] : memref<32xf32, #tpu.memory_space<smem>>
    %118 = vector.broadcast %117 : f32 to vector<8x128xf32>
    %119 = arith.mulf %118, %1 : vector<8x128xf32>
    %c15 = arith.constant 15 : index
    %120 = memref.load %arg1[%c15] : memref<32xf32, #tpu.memory_space<smem>>
    %121 = vector.broadcast %120 : f32 to vector<8x128xf32>
    %122 = arith.mulf %121, %3 : vector<8x128xf32>
    %123 = arith.addf %119, %122 : vector<8x128xf32>
    %c7_27 = arith.constant 7 : index
    %124 = memref.load %arg2[%c7_27] : memref<16xf32, #tpu.memory_space<smem>>
    %125 = vector.broadcast %124 : f32 to vector<8x128xf32>
    %126 = arith.addf %123, %125 : vector<8x128xf32>
    %cst_28 = arith.constant 0.000000e+00 : f32
    %127 = vector.broadcast %cst_28 : f32 to vector<8x128xf32>
    %128 = arith.maximumf %126, %127 : vector<8x128xf32>
    %c7_29 = arith.constant 7 : index
    %129 = memref.load %arg3[%c7_29] : memref<16xf32, #tpu.memory_space<smem>>
    %130 = vector.broadcast %129 : f32 to vector<8x128xf32>
    %131 = arith.mulf %130, %128 : vector<8x128xf32>
    %132 = arith.addf %116, %131 : vector<8x128xf32>
    %c16 = arith.constant 16 : index
    %133 = memref.load %arg1[%c16] : memref<32xf32, #tpu.memory_space<smem>>
    %134 = vector.broadcast %133 : f32 to vector<8x128xf32>
    %135 = arith.mulf %134, %1 : vector<8x128xf32>
    %c17 = arith.constant 17 : index
    %136 = memref.load %arg1[%c17] : memref<32xf32, #tpu.memory_space<smem>>
    %137 = vector.broadcast %136 : f32 to vector<8x128xf32>
    %138 = arith.mulf %137, %3 : vector<8x128xf32>
    %139 = arith.addf %135, %138 : vector<8x128xf32>
    %c8_30 = arith.constant 8 : index
    %140 = memref.load %arg2[%c8_30] : memref<16xf32, #tpu.memory_space<smem>>
    %141 = vector.broadcast %140 : f32 to vector<8x128xf32>
    %142 = arith.addf %139, %141 : vector<8x128xf32>
    %cst_31 = arith.constant 0.000000e+00 : f32
    %143 = vector.broadcast %cst_31 : f32 to vector<8x128xf32>
    %144 = arith.maximumf %142, %143 : vector<8x128xf32>
    %c8_32 = arith.constant 8 : index
    %145 = memref.load %arg3[%c8_32] : memref<16xf32, #tpu.memory_space<smem>>
    %146 = vector.broadcast %145 : f32 to vector<8x128xf32>
    %147 = arith.mulf %146, %144 : vector<8x128xf32>
    %148 = arith.addf %132, %147 : vector<8x128xf32>
    %c18 = arith.constant 18 : index
    %149 = memref.load %arg1[%c18] : memref<32xf32, #tpu.memory_space<smem>>
    %150 = vector.broadcast %149 : f32 to vector<8x128xf32>
    %151 = arith.mulf %150, %1 : vector<8x128xf32>
    %c19 = arith.constant 19 : index
    %152 = memref.load %arg1[%c19] : memref<32xf32, #tpu.memory_space<smem>>
    %153 = vector.broadcast %152 : f32 to vector<8x128xf32>
    %154 = arith.mulf %153, %3 : vector<8x128xf32>
    %155 = arith.addf %151, %154 : vector<8x128xf32>
    %c9_33 = arith.constant 9 : index
    %156 = memref.load %arg2[%c9_33] : memref<16xf32, #tpu.memory_space<smem>>
    %157 = vector.broadcast %156 : f32 to vector<8x128xf32>
    %158 = arith.addf %155, %157 : vector<8x128xf32>
    %cst_34 = arith.constant 0.000000e+00 : f32
    %159 = vector.broadcast %cst_34 : f32 to vector<8x128xf32>
    %160 = arith.maximumf %158, %159 : vector<8x128xf32>
    %c9_35 = arith.constant 9 : index
    %161 = memref.load %arg3[%c9_35] : memref<16xf32, #tpu.memory_space<smem>>
    %162 = vector.broadcast %161 : f32 to vector<8x128xf32>
    %163 = arith.mulf %162, %160 : vector<8x128xf32>
    %164 = arith.addf %148, %163 : vector<8x128xf32>
    %c20 = arith.constant 20 : index
    %165 = memref.load %arg1[%c20] : memref<32xf32, #tpu.memory_space<smem>>
    %166 = vector.broadcast %165 : f32 to vector<8x128xf32>
    %167 = arith.mulf %166, %1 : vector<8x128xf32>
    %c21 = arith.constant 21 : index
    %168 = memref.load %arg1[%c21] : memref<32xf32, #tpu.memory_space<smem>>
    %169 = vector.broadcast %168 : f32 to vector<8x128xf32>
    %170 = arith.mulf %169, %3 : vector<8x128xf32>
    %171 = arith.addf %167, %170 : vector<8x128xf32>
    %c10_36 = arith.constant 10 : index
    %172 = memref.load %arg2[%c10_36] : memref<16xf32, #tpu.memory_space<smem>>
    %173 = vector.broadcast %172 : f32 to vector<8x128xf32>
    %174 = arith.addf %171, %173 : vector<8x128xf32>
    %cst_37 = arith.constant 0.000000e+00 : f32
    %175 = vector.broadcast %cst_37 : f32 to vector<8x128xf32>
    %176 = arith.maximumf %174, %175 : vector<8x128xf32>
    %c10_38 = arith.constant 10 : index
    %177 = memref.load %arg3[%c10_38] : memref<16xf32, #tpu.memory_space<smem>>
    %178 = vector.broadcast %177 : f32 to vector<8x128xf32>
    %179 = arith.mulf %178, %176 : vector<8x128xf32>
    %180 = arith.addf %164, %179 : vector<8x128xf32>
    %c22 = arith.constant 22 : index
    %181 = memref.load %arg1[%c22] : memref<32xf32, #tpu.memory_space<smem>>
    %182 = vector.broadcast %181 : f32 to vector<8x128xf32>
    %183 = arith.mulf %182, %1 : vector<8x128xf32>
    %c23 = arith.constant 23 : index
    %184 = memref.load %arg1[%c23] : memref<32xf32, #tpu.memory_space<smem>>
    %185 = vector.broadcast %184 : f32 to vector<8x128xf32>
    %186 = arith.mulf %185, %3 : vector<8x128xf32>
    %187 = arith.addf %183, %186 : vector<8x128xf32>
    %c11_39 = arith.constant 11 : index
    %188 = memref.load %arg2[%c11_39] : memref<16xf32, #tpu.memory_space<smem>>
    %189 = vector.broadcast %188 : f32 to vector<8x128xf32>
    %190 = arith.addf %187, %189 : vector<8x128xf32>
    %cst_40 = arith.constant 0.000000e+00 : f32
    %191 = vector.broadcast %cst_40 : f32 to vector<8x128xf32>
    %192 = arith.maximumf %190, %191 : vector<8x128xf32>
    %c11_41 = arith.constant 11 : index
    %193 = memref.load %arg3[%c11_41] : memref<16xf32, #tpu.memory_space<smem>>
    %194 = vector.broadcast %193 : f32 to vector<8x128xf32>
    %195 = arith.mulf %194, %192 : vector<8x128xf32>
    %196 = arith.addf %180, %195 : vector<8x128xf32>
    %c24 = arith.constant 24 : index
    %197 = memref.load %arg1[%c24] : memref<32xf32, #tpu.memory_space<smem>>
    %198 = vector.broadcast %197 : f32 to vector<8x128xf32>
    %199 = arith.mulf %198, %1 : vector<8x128xf32>
    %c25 = arith.constant 25 : index
    %200 = memref.load %arg1[%c25] : memref<32xf32, #tpu.memory_space<smem>>
    %201 = vector.broadcast %200 : f32 to vector<8x128xf32>
    %202 = arith.mulf %201, %3 : vector<8x128xf32>
    %203 = arith.addf %199, %202 : vector<8x128xf32>
    %c12_42 = arith.constant 12 : index
    %204 = memref.load %arg2[%c12_42] : memref<16xf32, #tpu.memory_space<smem>>
    %205 = vector.broadcast %204 : f32 to vector<8x128xf32>
    %206 = arith.addf %203, %205 : vector<8x128xf32>
    %cst_43 = arith.constant 0.000000e+00 : f32
    %207 = vector.broadcast %cst_43 : f32 to vector<8x128xf32>
    %208 = arith.maximumf %206, %207 : vector<8x128xf32>
    %c12_44 = arith.constant 12 : index
    %209 = memref.load %arg3[%c12_44] : memref<16xf32, #tpu.memory_space<smem>>
    %210 = vector.broadcast %209 : f32 to vector<8x128xf32>
    %211 = arith.mulf %210, %208 : vector<8x128xf32>
    %212 = arith.addf %196, %211 : vector<8x128xf32>
    %c26 = arith.constant 26 : index
    %213 = memref.load %arg1[%c26] : memref<32xf32, #tpu.memory_space<smem>>
    %214 = vector.broadcast %213 : f32 to vector<8x128xf32>
    %215 = arith.mulf %214, %1 : vector<8x128xf32>
    %c27 = arith.constant 27 : index
    %216 = memref.load %arg1[%c27] : memref<32xf32, #tpu.memory_space<smem>>
    %217 = vector.broadcast %216 : f32 to vector<8x128xf32>
    %218 = arith.mulf %217, %3 : vector<8x128xf32>
    %219 = arith.addf %215, %218 : vector<8x128xf32>
    %c13_45 = arith.constant 13 : index
    %220 = memref.load %arg2[%c13_45] : memref<16xf32, #tpu.memory_space<smem>>
    %221 = vector.broadcast %220 : f32 to vector<8x128xf32>
    %222 = arith.addf %219, %221 : vector<8x128xf32>
    %cst_46 = arith.constant 0.000000e+00 : f32
    %223 = vector.broadcast %cst_46 : f32 to vector<8x128xf32>
    %224 = arith.maximumf %222, %223 : vector<8x128xf32>
    %c13_47 = arith.constant 13 : index
    %225 = memref.load %arg3[%c13_47] : memref<16xf32, #tpu.memory_space<smem>>
    %226 = vector.broadcast %225 : f32 to vector<8x128xf32>
    %227 = arith.mulf %226, %224 : vector<8x128xf32>
    %228 = arith.addf %212, %227 : vector<8x128xf32>
    %c28 = arith.constant 28 : index
    %229 = memref.load %arg1[%c28] : memref<32xf32, #tpu.memory_space<smem>>
    %230 = vector.broadcast %229 : f32 to vector<8x128xf32>
    %231 = arith.mulf %230, %1 : vector<8x128xf32>
    %c29 = arith.constant 29 : index
    %232 = memref.load %arg1[%c29] : memref<32xf32, #tpu.memory_space<smem>>
    %233 = vector.broadcast %232 : f32 to vector<8x128xf32>
    %234 = arith.mulf %233, %3 : vector<8x128xf32>
    %235 = arith.addf %231, %234 : vector<8x128xf32>
    %c14_48 = arith.constant 14 : index
    %236 = memref.load %arg2[%c14_48] : memref<16xf32, #tpu.memory_space<smem>>
    %237 = vector.broadcast %236 : f32 to vector<8x128xf32>
    %238 = arith.addf %235, %237 : vector<8x128xf32>
    %cst_49 = arith.constant 0.000000e+00 : f32
    %239 = vector.broadcast %cst_49 : f32 to vector<8x128xf32>
    %240 = arith.maximumf %238, %239 : vector<8x128xf32>
    %c14_50 = arith.constant 14 : index
    %241 = memref.load %arg3[%c14_50] : memref<16xf32, #tpu.memory_space<smem>>
    %242 = vector.broadcast %241 : f32 to vector<8x128xf32>
    %243 = arith.mulf %242, %240 : vector<8x128xf32>
    %244 = arith.addf %228, %243 : vector<8x128xf32>
    %c30 = arith.constant 30 : index
    %245 = memref.load %arg1[%c30] : memref<32xf32, #tpu.memory_space<smem>>
    %246 = vector.broadcast %245 : f32 to vector<8x128xf32>
    %247 = arith.mulf %246, %1 : vector<8x128xf32>
    %c31 = arith.constant 31 : index
    %248 = memref.load %arg1[%c31] : memref<32xf32, #tpu.memory_space<smem>>
    %249 = vector.broadcast %248 : f32 to vector<8x128xf32>
    %250 = arith.mulf %249, %3 : vector<8x128xf32>
    %251 = arith.addf %247, %250 : vector<8x128xf32>
    %c15_51 = arith.constant 15 : index
    %252 = memref.load %arg2[%c15_51] : memref<16xf32, #tpu.memory_space<smem>>
    %253 = vector.broadcast %252 : f32 to vector<8x128xf32>
    %254 = arith.addf %251, %253 : vector<8x128xf32>
    %cst_52 = arith.constant 0.000000e+00 : f32
    %255 = vector.broadcast %cst_52 : f32 to vector<8x128xf32>
    %256 = arith.maximumf %254, %255 : vector<8x128xf32>
    %c15_53 = arith.constant 15 : index
    %257 = memref.load %arg3[%c15_53] : memref<16xf32, #tpu.memory_space<smem>>
    %258 = vector.broadcast %257 : f32 to vector<8x128xf32>
    %259 = arith.mulf %258, %256 : vector<8x128xf32>
    %260 = arith.addf %244, %259 : vector<8x128xf32>
    %c0_54 = arith.constant 0 : index
    %261 = memref.load %arg4[%c0_54] : memref<1xf32, #tpu.memory_space<smem>>
    %262 = vector.broadcast %261 : f32 to vector<8x128xf32>
    %263 = arith.addf %260, %262 : vector<8x128xf32>
    %cst_55 = arith.constant 0.000000e+00 : f32
    %264 = vector.broadcast %cst_55 : f32 to vector<8x128xf32>
    %265 = arith.subf %264, %263 : vector<8x128xf32>
    %266 = math.exp %265 : vector<8x128xf32>
    %cst_56 = arith.constant 1.000000e+00 : f32
    %267 = vector.broadcast %cst_56 : f32 to vector<8x128xf32>
    %268 = arith.addf %267, %266 : vector<8x128xf32>
    %269 = tpu.reciprocal %268 : vector<8x128xf32> -> vector<8x128xf32>
    %c0_57 = arith.constant 0 : index
    %c0_58 = arith.constant 0 : index
    %270 = vector.load %arg6[%c0_57, %c0_58] : memref<8x128xf32, #tpu.memory_space<vmem>>, vector<8x128xf32>
    tpu.vector_store %arg6[%c0_57, %c0_58], %269 {strides = array<i32>} : memref<8x128xf32, #tpu.memory_space<vmem>>, vector<8x128xf32>,
    return
  }
  func.func @transform_0(%arg0: i32) -> i32 {
    %c0_i32 = arith.constant 0 : i32
    %c0_i32_0 = arith.constant 0 : i32
    return %c0_i32 : i32
  }
  func.func @transform_1(%arg0: i32) -> i32 {
    %c0_i32 = arith.constant 0 : i32
    %c0_i32_0 = arith.constant 0 : i32
    return %c0_i32 : i32
  }
  func.func @transform_2(%arg0: i32) -> i32 {
    %c0_i32 = arith.constant 0 : i32
    %c0_i32_0 = arith.constant 0 : i32
    return %c0_i32 : i32
  }
  func.func @transform_3(%arg0: i32) -> i32 {
    %c0_i32 = arith.constant 0 : i32
    %c0_i32_0 = arith.constant 0 : i32
    return %c0_i32 : i32
  }
  func.func @transform_4(%arg0: i32) -> (i32, i32, i32) {
    %c0_i32 = arith.constant 0 : i32
    %c0_i32_0 = arith.constant 0 : i32
    %c0_i32_1 = arith.constant 0 : i32
    return %c0_i32, %arg0, %c0_i32_0 : i32, i32, i32
  }
  func.func @transform_5(%arg0: i32) -> (i32, i32) {
    %c0_i32 = arith.constant 0 : i32
    %c0_i32_0 = arith.constant 0 : i32
    return %arg0, %c0_i32 : i32, i32
  }
}

</mosaic_0001>

<bundles_post_ra>
// kernel: tpu_custom_call.1
= control target key start
LH: loop header
LB: loop body
LE: loop exit
PB: predicated region body
PF: predicated region fallthrough
CT: control target
= control target key end

     0   :  { %11 = vsyncpa [#allocation6], 0  ;;  %s781_s0 = inlined_call_operand.vmem [shape: f32[32], index: 0, kind: input, shape index: {}]   ;;  %s782_s1 = inlined_call_operand.vmem [shape: f32[16], index: 1, kind: input, shape index: {}]   ;;  %s783_s2 = inlined_call_operand.vmem [shape: f32[16], index: 2, kind: input, shape index: {}]   ;;  %s784_s3 = inlined_call_operand.<no memory space> [shape: f32[1], index: 3, kind: input, shape index: {}]   ;;  %s785_s4 = inlined_call_operand.hbm [shape: f32[2,8,128], index: 4, kind: input, shape index: {}]   ;;  %s786_s5 = inlined_call_operand.hbm [shape: f32[8,128], index: 5, kind: output, shape index: {}]  }
   0x1   :  { %12 = vsyncpa [#allocation8], 0 }
   0x2   :  { %13 = vsyncpa [#allocation4], 0  ;;  %s31_s20 = sshll.u32 %s782_s1, 4  ;;  %s32_s20 = int_to_ptr.vmem [resolvable:$true] %s31_s20 }
   0x3   :  { %14 = vsyncpa [#allocation5], 0  ;;  %s21_s23 = sshll.u32 %s781_s0, 4  ;;  %s413_s24 = scalar_lea.vmem %s32_s20, 16  ;;  %s22_s23 = int_to_ptr.vmem [resolvable:$true] %s21_s23 }
   0x4   :  { %p414_p0 = scmp.ne.s32.totalorder %s32_s20, %s413_s24  ;;  %p418_p1 = scmp.lt.s32.totalorder %s32_s20, %s32_s20 }
   0x5   :  { %p419_p2 = scmp.lt.s32.totalorder %s413_s24, %s413_s24 }
   0x7   :  { %p420_p3 = por %p419_p2, %p418_p1 }
   0x9   :  { %p421_p4 = pnand %p420_p3, %p414_p0 }
   0xb   :  { %424 = shalt.err (!%p421_p4)
}
   0xc   :  { %s501_s25 = smov [#allocation7]   ;;  %s425_s26 = scalar_lea.vmem %s22_s23, 16 }
   0xd   :  { %34 = dma.vmem_to_smem %s32_s20, 16, %s501_s25, [#allocation8]  }
   0xe   :  { %p426_p5 = scmp.ne.s32.totalorder %s22_s23, %s425_s26  ;;  %p430_p6 = scmp.lt.s32.totalorder %s22_s23, %s22_s23 }
   0xf   :  { %p431_p7 = scmp.lt.s32.totalorder %s425_s26, %s425_s26 }
  0x11   :  { %p432_p8 = por %p431_p7, %p430_p6 }
  0x13   :  { %p433_p9 = pnand %p432_p8, %p426_p5 }
  0x15   :  { %436 = shalt.err (!%p433_p9)
}
  0x16   :  { %s502_s1 = smov [#allocation3]   ;;  %s41_s28 = sshll.u32 %s783_s2, 4  ;;  %s42_s28 = int_to_ptr.vmem [resolvable:$true] %s41_s28 }
  0x17   :  { %24 = dma.vmem_to_smem %s22_s23, 16, %s502_s1, [#allocation6]  }
  0x18   :  { %s437_s29 = scalar_lea.vmem %s42_s28, 16  ;;  %p442_p11 = scmp.lt.s32.totalorder %s42_s28, %s42_s28 }
  0x19   :  { %p438_p10 = scmp.ne.s32.totalorder %s42_s28, %s437_s29  ;;  %p443_p12 = scmp.lt.s32.totalorder %s437_s29, %s437_s29 }
  0x1b   :  { %p444_p13 = por %p443_p12, %p442_p11 }
  0x1d   :  { %p445_p0 = pnand %p444_p13, %p438_p10 }
  0x1f   :  { %448 = shalt.err (!%p445_p0)
}
  0x20   :  { %s503_s30 = smov [#allocation9]   ;;  %s504_s6 = smov [#allocation10]  }
  0x21   :  { %44 = dma.vmem_to_smem %s42_s28, 16, %s503_s30, [#allocation8]  }
  0x22   :  { %s52_s7 = sshll.u32 %s504_s6, 4  ;;  %s449_s10 = scalar_lea.hbm %s785_s4, 256  ;;  %s53_s7 = int_to_ptr.vmem [resolvable:$true] %s52_s7 }
  0x23   :  { %p450_p1 = scmp.ne.s32.totalorder %s785_s4, %s449_s10  ;;  %p453_p2 = scmp.lt.u32.totalorder %s449_s10, %s785_s4 }
  0x25   :  { %p455_p3 = pnand %p453_p2, %p450_p1 }
  0x27   :  { %458 = shalt.err (!%p455_p3)
}
  0x28   :  { %s459_s14 = scalar_lea.vmem %s53_s7, 256  ;;  %p464_p5 = scmp.lt.s32.totalorder %s53_s7, %s53_s7 }
  0x29   :  { %p460_p4 = scmp.ne.s32.totalorder %s53_s7, %s459_s14  ;;  %p465_p6 = scmp.lt.s32.totalorder %s459_s14, %s459_s14 }
  0x2b   :  { %p466_p7 = por %p465_p6, %p464_p5 }
  0x2d   :  { %p467_p8 = pnand %p466_p7, %p460_p4 }
  0x2f   :  { %470 = shalt.err (!%p467_p8)
}
  0x30   :  { %s505_s15 = smov 128   ;;  %s506_s16 = smov 8  }
  0x31   :  { %58 = dma.hbm_to_vmem [thread:$0]  %s785_s4, 256, %s53_s7, [#allocation4], %s505_s15, %s505_s15, %s506_s16  }
  0x32   :  { %493 = dma.done.wait [#allocation6], 16  }
  0x33   :  { %494 = vsyncadd [#allocation6], 4294967280 }
  0x34   :  { %495 = dma.done.wait [#allocation8], 32  }
  0x35   :  { %496 = vsyncadd [#allocation8], 4294967264 }
  0x36   :  { %497 = dma.done.wait [#allocation4], 256  }
  0x37   :  { %498 = vsyncadd [#allocation4], 4294967040 }
  0x38   :  { %71 = sfence }
  0x39   :  { %s75_s19 = sld [smem:[#allocation3]]  ;;  %s341_s20 = sld [smem:[#allocation3 + $0x1]]  ;;  %v567_v0 = vld [vmem:[#allocation10] sm:$0xff]  ;;  %v569_v1 = vld [vmem:[#allocation10 + $0x8] sm:$0xff] }
  0x3a   :  { %s559_s21 = sld [smem:[#allocation7]]  ;;  %s342_s23 = sld [smem:[#allocation3 + $0x2]] }
  0x3b   :  { %s561_s22 = sld [smem:[#allocation9]]  ;;  %s343_s24 = sld [smem:[#allocation3 + $0x3]] }
  0x3c   :  { %s563_s25 = sld [smem:[#allocation7 + $0x1]]  ;;  %s346_s4 = sld [smem:[#allocation3 + $0x4]] }
  0x3d   :  { %s565_s26 = sld [smem:[#allocation9 + $0x1]]  ;;  %s347_s1 = sld [smem:[#allocation3 + $0x5]] }
  0x3e   :  { %s571_s0 = sld [smem:[#allocation7 + $0x2]]  ;;  %s575_s28 = sld [smem:[#allocation3 + $0x6]] }
  0x3f   :  { %s573_s27 = sld [smem:[#allocation9 + $0x2]]  ;;  %v76_v2 = vstv %s75_s19  ;;  %v79_v3 = vstv %s341_s20  ;;  %s577_s29 = sld [smem:[#allocation3 + $0x7]] }
  0x40   :  { %v77_v4 = vmul.f32 %v76_v2, %v567_v0  ;;  %v80_v5 = vmul.f32 %v79_v3, %v569_v1  ;;  %s581_s30 = sld [smem:[#allocation7 + $0x3]]  ;;  %v83_v6 = vstv %s559_s21  ;;  %v91_v7 = vstv %s342_s23  ;;  %s586_s7 = sld [smem:[#allocation3 + $0x8]] }
  0x41   :  { %s583_s6 = sld [smem:[#allocation9 + $0x3]]  ;;  %v94_v8 = vstv %s343_s24  ;;  %s588_s8 = sld [smem:[#allocation3 + $0x9]]  ;;  %v92_v10 = vmul.f32 %v91_v7, %v567_v0  ;;  %v87_v12 = vstv %s561_s22 }
  0x42   :  { %v81_v9 = vadd.f32 %v80_v5, %v77_v4  ;;  %v95_v11 = vmul.f32 %v94_v8, %v569_v1  ;;  %s592_s9 = sld [smem:[#allocation7 + $0x4]]  ;;  %v98_v13 = vstv %s563_s25  ;;  %v106_v14 = vstv %s346_s4  ;;  %s598_s11 = sld [smem:[#allocation3 + $0xa]] }
  0x43   :  { %s594_s10 = sld [smem:[#allocation9 + $0x4]]  ;;  %v109_v15 = vstv %s347_s1  ;;  %s600_s12 = sld [smem:[#allocation3 + $0xb]]  ;;  %v107_v18 = vmul.f32 %v106_v14, %v567_v0  ;;  %v102_v20 = vstv %s565_s26 }
  0x44   :  { %v84_v16 = vadd.f32 %v83_v6, %v81_v9  ;;  %v96_v17 = vadd.f32 %v95_v11, %v92_v10  ;;  %v110_v19 = vmul.f32 %v109_v15, %v569_v1  ;;  %s604_s2 = sld [smem:[#allocation7 + $0x5]]  ;;  %v113_v21 = vstv %s571_s0  ;;  %s610_s13 = sld [smem:[#allocation3 + $0xc]] }
  0x45   :  { %v121_v22 = vstv %s575_s28  ;;  %v124_v23 = vstv %s577_s29  ;;  %s612_s14 = sld [smem:[#allocation3 + $0xd]]  ;;  %v117_v28 = vstv %s573_s27  ;;  %s621_s16 = sld [smem:[#allocation7 + $0x6]] }
  0x46   :  { %v85_v24 = vmax.f32 %v84_v16, 0.0  ;;  %v99_v25 = vadd.f32 %v98_v13, %v96_v17  ;;  %v111_v26 = vadd.f32 %v110_v19, %v107_v18  ;;  %v122_v27 = vmul.f32 %v121_v22, %v567_v0  ;;  %s619_s15 = sld [smem:[#allocation9 + $0x5]]  ;;  %s624_s17 = sld [smem:[#allocation3 + $0xe]] }
  0x47   :  { %v125_v29 = vmul.f32 %v124_v23, %v569_v1  ;;  %v128_v30 = vstv %s581_s30  ;;  %v136_v31 = vstv %s586_s7  ;;  %s626_s18 = sld [smem:[#allocation3 + $0xf]]  ;;  %v132_v37 = vstv %s583_s6  ;;  %s633_s19 = sld [smem:[#allocation9 + $0x6]] }
  0x48   :  { %v88_v32 = vmul.f32 %v87_v12, %v85_v24  ;;  %v100_v33 = vmax.f32 %v99_v25, 0.0  ;;  %v114_v34 = vadd.f32 %v113_v21, %v111_v26  ;;  %v137_v35 = vmul.f32 %v136_v31, %v567_v0  ;;  %s635_s20 = sld [smem:[#allocation7 + $0x7]]  ;;  %s640_s21 = sld [smem:[#allocation3 + $0x10]] }
  0x49   :  { %v126_v36 = vadd.f32 %v125_v29, %v122_v27  ;;  %v139_v38 = vstv %s588_s8  ;;  %v143_v39 = vstv %s592_s9  ;;  %v151_v43 = vstv %s598_s11  ;;  %s642_s22 = sld [smem:[#allocation3 + $0x11]]  ;;  %s648_s23 = sld [smem:[#allocation9 + $0x7]] }
  0x4a   :  { %v103_v40 = vmul.f32 %v102_v20, %v100_v33  ;;  %v115_v41 = vmax.f32 %v114_v34, 0.0  ;;  %v140_v42 = vmul.f32 %v139_v38, %v569_v1  ;;  %v147_v45 = vstv %s594_s10  ;;  %s650_s24 = sld [smem:[#allocation7 + $0x8]]  ;;  %s653_s25 = sld [smem:[#allocation3 + $0x12]] }
  0x4b   :  { %v129_v44 = vadd.f32 %v128_v30, %v126_v36  ;;  %v152_v46 = vmul.f32 %v151_v43, %v567_v0  ;;  %v154_v47 = vstv %s600_s12  ;;  %v158_v53 = vstv %s604_s2  ;;  %s655_s26 = sld [smem:[#allocation3 + $0x13]]  ;;  %s660_s4 = sld [smem:[#allocation9 + $0x8]] }
  0x4c   :  { %v104_v48 = vadd.f32 %v103_v40, %v88_v32  ;;  %v118_v49 = vmul.f32 %v117_v28, %v115_v41  ;;  %v141_v50 = vadd.f32 %v140_v42, %v137_v35  ;;  %v155_v51 = vmul.f32 %v154_v47, %v569_v1  ;;  %s664_s1 = sld [smem:[#allocation7 + $0x9]]  ;;  %s666_s0 = sld [smem:[#allocation3 + $0x14]] }
  0x4d   :  { %v130_v52 = vmax.f32 %v129_v44, 0.0  ;;  %v166_v54 = vstv %s610_s13  ;;  %v169_v55 = vstv %s612_s14  ;;  %v162_v61 = vstv %s619_s15  ;;  %s672_s27 = sld [smem:[#allocation9 + $0x9]]  ;;  %s674_s28 = sld [smem:[#allocation3 + $0x15]] }
  0x4e   :  { %v119_v56 = vadd.f32 %v118_v49, %v104_v48  ;;  %v144_v57 = vadd.f32 %v143_v39, %v141_v50  ;;  %v156_v58 = vadd.f32 %v155_v51, %v152_v46  ;;  %v167_v59 = vmul.f32 %v166_v54, %v567_v0  ;;  %s678_s29 = sld [smem:[#allocation3 + $0x16]]  ;;  %s682_s30 = sld [smem:[#allocation7 + $0xa]] }
  0x4f   :  { %v133_v60 = vmul.f32 %v132_v37, %v130_v52  ;;  %v170_v62 = vmul.f32 %v169_v55, %v569_v1  ;;  %v173_v63 = vstv %s621_s16  ;;  %v181_v4 = vstv %s624_s17  ;;  %s684_s6 = sld [smem:[#allocation3 + $0x17]]  ;;  %s688_s7 = sld [smem:[#allocation9 + $0xa]] }
  0x50   :  { %v145_v2 = vmax.f32 %v144_v57, 0.0  ;;  %v159_v3 = vadd.f32 %v158_v53, %v156_v58  ;;  %v184_v5 = vstv %s626_s18  ;;  %v182_v8 = vmul.f32 %v181_v4, %v567_v0  ;;  %s690_s8 = sld [smem:[#allocation7 + $0xb]]  ;;  %s694_s9 = sld [smem:[#allocation3 + $0x18]] }
  0x51   :  { %v134_v6 = vadd.f32 %v133_v60, %v119_v56  ;;  %v171_v7 = vadd.f32 %v170_v62, %v167_v59  ;;  %v185_v9 = vmul.f32 %v184_v5, %v569_v1  ;;  %v177_v12 = vstv %s633_s19  ;;  %s696_s10 = sld [smem:[#allocation3 + $0x19]]  ;;  %s700_s11 = sld [smem:[#allocation7 + $0xc]] }
  0x52   :  { %v148_v10 = vmul.f32 %v147_v45, %v145_v2  ;;  %v160_v11 = vmax.f32 %v159_v3, 0.0  ;;  %v188_v13 = vstv %s635_s20  ;;  %v196_v16 = vstv %s640_s21  ;;  %s705_s12 = sld [smem:[#allocation3 + $0x1a]]  ;;  %s707_s2 = sld [smem:[#allocation3 + $0x1b]] }
  0x53   :  { %v174_v14 = vadd.f32 %v173_v63, %v171_v7  ;;  %v186_v15 = vadd.f32 %v185_v9, %v182_v8  ;;  %v199_v17 = vstv %s642_s22  ;;  %v197_v20 = vmul.f32 %v196_v16, %v567_v0  ;;  %s712_s13 = sld [smem:[#allocation9 + $0xb]]  ;;  %s714_s14 = sld [smem:[#allocation7 + $0xd]] }
  0x54   :  { %v149_v18 = vadd.f32 %v148_v10, %v134_v6  ;;  %v163_v19 = vmul.f32 %v162_v61, %v160_v11  ;;  %v200_v21 = vmul.f32 %v199_v17, %v569_v1  ;;  %v192_v24 = vstv %s648_s23  ;;  %s718_s15 = sld [smem:[#allocation3 + $0x1c]]  ;;  %s720_s16 = sld [smem:[#allocation3 + $0x1d]] }
  0x55   :  { %v175_v22 = vmax.f32 %v174_v14, 0.0  ;;  %v189_v23 = vadd.f32 %v188_v13, %v186_v15  ;;  %v203_v25 = vstv %s650_s24  ;;  %v211_v28 = vstv %s653_s25  ;;  %s727_s17 = sld [smem:[#allocation9 + $0xc]]  ;;  %s729_s18 = sld [smem:[#allocation7 + $0xe]] }
  0x56   :  { %v164_v26 = vadd.f32 %v163_v19, %v149_v18  ;;  %v201_v27 = vadd.f32 %v200_v21, %v197_v20  ;;  %v214_v29 = vstv %s655_s26  ;;  %v212_v32 = vmul.f32 %v211_v28, %v567_v0  ;;  %s734_s19 = sld [smem:[#allocation3 + $0x1e]]  ;;  %s737_s20 = sld [smem:[#allocation9 + $0xd]] }
  0x57   :  { %v178_v30 = vmul.f32 %v177_v12, %v175_v22  ;;  %v190_v31 = vmax.f32 %v189_v23, 0.0  ;;  %v215_v33 = vmul.f32 %v214_v29, %v569_v1  ;;  %v207_v35 = vstv %s660_s4  ;;  %s739_s21 = sld [smem:[#allocation3 + $0x1f]]  ;;  %s746_s22 = sld [smem:[#allocation9 + $0xe]] }
  0x58   :  { %v204_v34 = vadd.f32 %v203_v25, %v201_v27  ;;  %v218_v36 = vstv %s664_s1  ;;  %v226_v37 = vstv %s666_s0  ;;  %v222_v43 = vstv %s672_s27  ;;  %s748_s23 = sld [smem:[#allocation7 + $0xf]]  ;;  %s507_s4 = smov [#allocation11]  }
  0x59   :  { %v179_v38 = vadd.f32 %v178_v30, %v164_v26  ;;  %v193_v39 = vmul.f32 %v192_v24, %v190_v31  ;;  %v216_v40 = vadd.f32 %v215_v33, %v212_v32  ;;  %v227_v41 = vmul.f32 %v226_v37, %v567_v0  ;;  %s401_s24 = sld [smem:[#allocation9 + $0xf]]  ;;  %s330_s1 = sshll.u32 %s507_s4, 4  ;;  %s331_s1 = int_to_ptr.vmem [resolvable:$true] %s330_s1 }
  0x5a   :  { %v205_v42 = vmax.f32 %v204_v34, 0.0  ;;  %v229_v44 = vstv %s674_s28  ;;  %v241_v48 = vstv %s678_s29  ;;  %v233_v50 = vstv %s682_s30  ;;  %s471_s0 = scalar_lea.vmem %s331_s1, 128  ;;  %p476_p10 = scmp.lt.s32.totalorder %s331_s1, %s331_s1 }
  0x5b   :  { %v194_v45 = vadd.f32 %v193_v39, %v179_v38  ;;  %v219_v46 = vadd.f32 %v218_v36, %v216_v40  ;;  %v230_v47 = vmul.f32 %v229_v44, %v569_v1  ;;  %v242_v51 = vmul.f32 %v241_v48, %v567_v0  ;;  %p472_p9 = scmp.ne.s32.totalorder %s331_s1, %s471_s0  ;;  %p477_p11 = scmp.lt.s32.totalorder %s471_s0, %s471_s0 }
  0x5c   :  { %v208_v49 = vmul.f32 %v207_v35, %v205_v42  ;;  %v244_v52 = vstv %s684_s6  ;;  %v237_v55 = vstv %s688_s7  ;;  %v248_v58 = vstv %s690_s8 }
  0x5d   :  { %v220_v53 = vmax.f32 %v219_v46, 0.0  ;;  %v231_v54 = vadd.f32 %v230_v47, %v227_v41  ;;  %v245_v56 = vmul.f32 %v244_v52, %v569_v1  ;;  %v256_v59 = vstv %s694_s9  ;;  %p478_p12 = por %p477_p11, %p476_p10 }
  0x5e   :  { %v209_v57 = vadd.f32 %v208_v49, %v194_v45  ;;  %v259_v60 = vstv %s696_s10  ;;  %v257_v2 = vmul.f32 %v256_v59, %v567_v0  ;;  %v263_v4 = vstv %s700_s11 }
  0x5f   :  { %v223_v61 = vmul.f32 %v222_v43, %v220_v53  ;;  %v234_v62 = vadd.f32 %v233_v50, %v231_v54  ;;  %v246_v63 = vadd.f32 %v245_v56, %v242_v51  ;;  %v260_v3 = vmul.f32 %v259_v60, %v569_v1  ;;  %p479_p13 = pnand %p478_p12, %p472_p9 }
  0x60   :  { %v271_v5 = vstv %s705_s12  ;;  %v274_v6 = vstv %s707_s2  ;;  %v252_v11 = vstv %s712_s13  ;;  %v278_v14 = vstv %s714_s14 }
  0x61   :  { %v224_v7 = vadd.f32 %v223_v61, %v209_v57  ;;  %v235_v8 = vmax.f32 %v234_v62, 0.0  ;;  %v249_v9 = vadd.f32 %v248_v58, %v246_v63  ;;  %v272_v10 = vmul.f32 %v271_v5, %v567_v0 }
  0x62   :  { %v261_v12 = vadd.f32 %v260_v3, %v257_v2  ;;  %v275_v13 = vmul.f32 %v274_v6, %v569_v1  ;;  %v286_v17 = vstv %s718_s15  ;;  %v289_v18 = vstv %s720_s16 }
  0x63   :  { %v238_v15 = vmul.f32 %v237_v55, %v235_v8  ;;  %v250_v16 = vmax.f32 %v249_v9, 0.0  ;;  %v287_v21 = vmul.f32 %v286_v17, %v567_v0  ;;  %v290_v22 = vmul.f32 %v289_v18, %v569_v1 }
  0x64   :  { %v264_v19 = vadd.f32 %v263_v4, %v261_v12  ;;  %v276_v20 = vadd.f32 %v275_v13, %v272_v10  ;;  %v267_v25 = vstv %s727_s17  ;;  %v293_v26 = vstv %s729_s18 }
  0x65   :  { %v239_v23 = vadd.f32 %v238_v15, %v224_v7  ;;  %v253_v24 = vmul.f32 %v252_v11, %v250_v16  ;;  %v291_v29 = vadd.f32 %v290_v22, %v287_v21  ;;  %v301_v30 = vstv %s734_s19 }
  0x66   :  { %v265_v27 = vmax.f32 %v264_v19, 0.0  ;;  %v279_v28 = vadd.f32 %v278_v14, %v276_v20  ;;  %v282_v32 = vstv %s737_s20  ;;  %v302_v33 = vmul.f32 %v301_v30, %v567_v0 }
  0x67   :  { %v254_v31 = vadd.f32 %v253_v24, %v239_v23  ;;  %v304_v34 = vstv %s739_s21  ;;  %v294_v37 = vadd.f32 %v293_v26, %v291_v29  ;;  %v297_v39 = vstv %s746_s22 }
  0x68   :  { %v268_v35 = vmul.f32 %v267_v25, %v265_v27  ;;  %v280_v36 = vmax.f32 %v279_v28, 0.0  ;;  %v305_v38 = vmul.f32 %v304_v34, %v569_v1  ;;  %v308_v40 = vstv %s748_s23 }
  0x69   :  { %v295_v43 = vmax.f32 %v294_v37, 0.0  ;;  %v312_v48 = vstv %s401_s24  ;;  %v316_v0 = vstv %s784_s3 }
  0x6a   :  { %v269_v41 = vadd.f32 %v268_v35, %v254_v31  ;;  %v283_v42 = vmul.f32 %v282_v32, %v280_v36  ;;  %v306_v44 = vadd.f32 %v305_v38, %v302_v33 }
  0x6b   :  { %v298_v46 = vmul.f32 %v297_v39, %v295_v43 }
  0x6c   :  { %v284_v45 = vadd.f32 %v283_v42, %v269_v41  ;;  %v309_v47 = vadd.f32 %v308_v40, %v306_v44 }
  0x6e   :  { %v299_v49 = vadd.f32 %v298_v46, %v284_v45  ;;  %v310_v50 = vmax.f32 %v309_v47, 0.0 }
  0x70   :  { %v313_v51 = vmul.f32 %v312_v48, %v310_v50 }
  0x72   :  { %v314_v52 = vadd.f32 %v313_v51, %v299_v49 }
  0x74   :  { %v317_v53 = vadd.f32 %v316_v0, %v314_v52 }
  0x76   :  { %v318_v1 = vsub.f32 0.0, %v317_v53 }
  0x78   :  { %v319_v54 = vmul.f32 1.442695, %v318_v1 }
  0x7a   :  { %409 = vpow2.f32 %v319_v54 }
  0x84   :  { %v410_v55 = vpop.eup %409 }
  0x85   :  { %v321_v56 = vadd.f32 1.0, %v410_v55 }
  0x87   :  { %411 = vrcp.f32 %v321_v56 }
  0x91   :  { %v412_v57 = vpop.eup %411 }
  0x92   :  { %323 = vst [vmem:[#allocation11] sm:$0xff] %v412_v57 }
  0x93   :  { %482 = shalt.err (!%p479_p13)
}
  0x94   :  { %s483_s28 = scalar_lea.hbm %s786_s5, 128 }
  0x95   :  { %p484_p0 = scmp.ne.s32.totalorder %s786_s5, %s483_s28  ;;  %p487_p1 = scmp.lt.u32.totalorder %s483_s28, %s786_s5 }
  0x97   :  { %p489_p2 = pnand %p487_p1, %p484_p0 }
  0x99   :  { %492 = shalt.err (!%p489_p2)
}
  0x9a   :  { %333 = dma.vmem_to_hbm [thread:$0]  %s331_s1, 128, %s786_s5, [#allocation5]  }
  0x9b   :  { %499 = dma.done.wait [#allocation5], 128  }
  0x9c   :  { %500 = vsyncadd [#allocation5], 4294967168 }
  0x9d   :  { %337 = vsyncpa [#allocation4], 1 }
  0x9e   :  { %338 = vsyncpa [#allocation5], 1 }
  0x9f   :  { %339 = vsyncpa [#allocation6], 1 }
  0xa0   :  { %340 = vsyncpa [#allocation8], 1 }

</bundles_post_ra>
